<compile_context>
chip_gen: v6e
topology: v6e:2x2x1
jax: 0.10.0
libtpu: 0.0.40
codegen_flags: <defaults>
</compile_context>

<pallas_src>
import jax
import jax.numpy as jnp
from jax.experimental import pallas as pl
from jax.experimental.pallas import tpu as pltpu


def _round_up(a, b):
    return (a + b - 1) // b * b


def _vmem_budget_and_limit():
    """Derive per-kernel VMEM tile budget and scoped limit from the chip."""
    cap = 64 * 1024 * 1024                       # conservative fallback (v7x)
    try:
        info = pltpu.get_tpu_info()
        c = getattr(info, "vmem_capacity_bytes", None)
        if c:
            cap = int(c)
    except Exception:
        pass
    limit = min((cap * 3) // 4, 112 * 1024 * 1024)   # 96 MiB on 128-MiB chips, 48 MiB on v7x
    budget = max((cap * 5) // 8, 8 * 1024 * 1024)    # 80 MiB / 40 MiB tile budget
    budget = min(budget, max(limit - 4 * 1024 * 1024, 4 * 1024 * 1024))
    return budget, limit


# --------------------------------------------------------------------------
# Fast path: full (bf16) weight resident in VMEM, one fused kernel.
# --------------------------------------------------------------------------
def _fused_logsoftmax_kernel(x_ref, w_ref, b_ref, o_ref):
    # x (tm, D) bf16, w (D, V) bf16, b (1, V) f32 -> o (tm, V) out_dtype
    logits = jnp.dot(x_ref[...], w_ref[...],
                     preferred_element_type=jnp.float32) + b_ref[...]
    shifted = logits - jnp.max(logits, axis=-1, keepdims=True)
    lse = jnp.log(jnp.sum(jnp.exp(shifted), axis=-1, keepdims=True))
    o_ref[...] = (shifted - lse).astype(o_ref.dtype)


# --------------------------------------------------------------------------
# Tiled path, pass 0: logits tiles (spilled to HBM) + online logsumexp.
# grid = (row super-tiles, vocab tiles, row sub-tiles)
# --------------------------------------------------------------------------
def _logits_lse_kernel(x_ref, w_ref, b_ref, logits_ref, lse_ref, m_ref, s_ref):
    j = pl.program_id(1)          # vocab tile (reduction axis, "arbitrary")
    i = pl.program_id(2)          # row sub-tile inside the current super-tile

    logits = jnp.dot(x_ref[...], w_ref[...],
                     preferred_element_type=jnp.float32) + b_ref[...]

    @pl.when(j == 0)
    def _():
        m_ref[i] = jnp.full(m_ref.shape[1:], -jnp.inf, jnp.float32)
        s_ref[i] = jnp.zeros(s_ref.shape[1:], jnp.float32)

    m_prev = m_ref[i]
    m_new = jnp.maximum(m_prev, jnp.max(logits, axis=-1, keepdims=True))
    s_ref[i] = (s_ref[i] * jnp.exp(m_prev - m_new)
                + jnp.sum(jnp.exp(logits - m_new), axis=-1, keepdims=True))
    m_ref[i] = m_new

    logits_ref[...] = logits.astype(logits_ref.dtype)

    @pl.when(j == pl.num_programs(1) - 1)
    def _():
        lse_ref[...] = m_ref[i] + jnp.log(s_ref[i])


# --------------------------------------------------------------------------
# Tiled path, pass 1: trivial elementwise normalize (no matmul recompute).
# --------------------------------------------------------------------------
def _normalize_kernel(logits_ref, lse_ref, o_ref):
    o_ref[...] = (logits_ref[...].astype(jnp.float32)
                  - lse_ref[...]).astype(o_ref.dtype)


def generator_forward(x, w, b, *, row_tile=None, vocab_tile=None,
                      out_dtype=jnp.float32, spill_dtype=jnp.bfloat16):
    """log_softmax(x @ w + b, axis=-1)  (PyTorch Generator.forward).

    x: (B, S, D), w: (D, V), b: (V,)  ->  (B, S, V) in out_dtype.
    out_dtype=jnp.bfloat16 halves the dominant HBM write stream (recommended
    on v5e); spill_dtype controls the intermediate logits precision on the
    vocab-tiled path (bf16 default halves spill traffic, float32 is tighter).
    """
    B, S, D = x.shape
    V = w.shape[1]
    N = B * S
    out_bytes = jnp.dtype(out_dtype).itemsize
    spill_bytes = jnp.dtype(spill_dtype).itemsize

    budget, vmem_limit = _vmem_budget_and_limit()

    # ---- row tile: MXU-aligned (256) for large N; a single tile for small N
    # (no forced split that would under-fill the MXU on 1-TC chips).
    if row_tile is not None:
        tm = _round_up(max(int(row_tile), 8), 8)
    elif N <= 512:
        tm = _round_up(N, 8)
    else:
        tm = 256
    nr = pl.cdiv(N, tm)

    # bf16 once, at the boundary: halves x/w DMA and feeds the MXU directly.
    x2 = x.reshape(N, D).astype(jnp.bfloat16)
    w_bf = w.astype(jnp.bfloat16)
    bias = b.reshape(1, V).astype(jnp.float32)

    # ---- fast path: whole weight resident in VMEM (fetched once), fused
    # matmul + log_softmax, logits never spilled.  Estimate is dtype-aware
    # and includes the f32 logits/exp temporaries.
    Vl = _round_up(V, 128)                       # lane-padded width (layout)
    fast_bytes = (2 * tm * D * 2                 # x tile (bf16, double-buffered)
                  + 2 * D * Vl * 2               # weight (bf16, double-buffered)
                  + 2 * Vl * 4                   # bias
                  + 2 * tm * Vl * out_bytes      # output tile (double-buffered)
                  + 2 * tm * Vl * 4)             # f32 logits / exp temporaries
    if vocab_tile is None and fast_bytes <= budget:
        Np = nr * tm
        if Np != N:
            x2 = jnp.pad(x2, ((0, Np - N), (0, 0)))
        out = pl.pallas_call(
            _fused_logsoftmax_kernel,
            out_shape=jax.ShapeDtypeStruct((Np, V), out_dtype),
            grid_spec=pltpu.PrefetchScalarGridSpec(
                num_scalar_prefetch=0,
                grid=(nr,),
                in_specs=[
                    pl.BlockSpec((tm, D), lambda i: (i, 0)),
                    pl.BlockSpec((D, V), lambda i: (0, 0)),   # resident weight
                    pl.BlockSpec((1, V), lambda i: (0, 0)),
                ],
                out_specs=pl.BlockSpec((tm, V), lambda i: (i, 0)),
            ),
            compiler_params=pltpu.CompilerParams(
                dimension_semantics=("parallel",),
                vmem_limit_bytes=vmem_limit),
        )(x2, w_bf, bias)
        return out[:N].reshape(B, S, V)

    # ---- tiled path ------------------------------------------------------
    # n_super = number of full weight sweeps (leading "parallel" axis).
    # Stats scratch holds (n_sub * tm) rows; (rows, 1) f32 pads to 128 lanes.
    stats_row_bytes = 2 * 512
    max_stats = budget // 4
    n_super = 1
    while n_super < nr and pl.cdiv(nr, n_super) * tm * stats_row_bytes > max_stats:
        n_super *= 2
    n_super = min(n_super, nr)
    n_sub = pl.cdiv(nr, n_super)

    # ---- budget-aware vocab tile (multiple of 128), accounting for D, tm
    # and dtypes; awkward V is padded up to a tile multiple below.
    fixed = 2 * tm * D * 2 + n_sub * tm * stats_row_bytes + (1 << 20)
    per_col = (2 * D * 2               # weight tile (bf16, double-buffered)
               + 2 * 4                 # bias tile
               + 2 * tm * spill_bytes  # spilled-logits tile (double-buffered)
               + 2 * tm * 4)           # f32 logits / exp temporaries
    if vocab_tile is not None:
        tv = _round_up(max(int(vocab_tile), 128), 128)
    else:
        tv = max(128, ((budget - fixed) // per_col) // 128 * 128)
    tv = min(tv, _round_up(V, 128))
    Vp = _round_up(V, tv)
    nv = Vp // tv

    # Megacore insurance: a second weight sweep is cheap relative to the
    # unavoidable traffic -> keep >= 2 leading (parallel) super tiles.
    if n_super == 1 and nr >= 2:
        w_sweep = D * Vp * 2
        base = nr * tm * (D * 2 * nv + Vp * (2 * spill_bytes + out_bytes)) + w_sweep
        if 4 * w_sweep <= base:
            n_super = 2
            n_sub = pl.cdiv(nr, n_super)

    Np = n_super * n_sub * tm
    if Np != N:
        x2 = jnp.pad(x2, ((0, Np - N), (0, 0)))
    if Vp != V:
        w_bf = jnp.pad(w_bf, ((0, 0), (0, Vp - V)))
        # Large-negative bias on padded vocab columns: exp() underflows to 0,
        # so the logsumexp (and real columns' log-probs) are unaffected.
        bias = jnp.pad(bias, ((0, 0), (0, Vp - V)), constant_values=-1e30)

    # Pass 0: logits tiles + online logsumexp.  Weight streamed n_super times.
    logits_spill, lse = pl.pallas_call(
        _logits_lse_kernel,
        out_shape=(jax.ShapeDtypeStruct((Np, Vp), spill_dtype),
                   jax.ShapeDtypeStruct((Np, 1), jnp.float32)),
        grid_spec=pltpu.PrefetchScalarGridSpec(
            num_scalar_prefetch=0,
            grid=(n_super, nv, n_sub),
            in_specs=[
                pl.BlockSpec((tm, D), lambda s, j, i: (s * n_sub + i, 0)),
                pl.BlockSpec((D, tv), lambda s, j, i: (0, j)),
                pl.BlockSpec((1, tv), lambda s, j, i: (0, j)),
            ],
            out_specs=(
                pl.BlockSpec((tm, tv), lambda s, j, i: (s * n_sub + i, j)),
                pl.BlockSpec((tm, 1), lambda s, j, i: (s * n_sub + i, 0)),
            ),
            scratch_shapes=[
                pltpu.VMEM((n_sub, tm, 1), jnp.float32),   # running max
                pltpu.VMEM((n_sub, tm, 1), jnp.float32),   # running sum(exp)
            ],
        ),
        compiler_params=pltpu.CompilerParams(
            dimension_semantics=("parallel", "arbitrary", "arbitrary"),
            vmem_limit_bytes=vmem_limit),
    )(x2, w_bf, bias)

    # Pass 1: mem-bound elementwise normalize (no second weight sweep / MXU).
    nra = Np // tm
    out = pl.pallas_call(
        _normalize_kernel,
        out_shape=jax.ShapeDtypeStruct((Np, Vp), out_dtype),
        grid_spec=pltpu.PrefetchScalarGridSpec(
            num_scalar_prefetch=0,
            grid=(nra, nv),
            in_specs=[
                pl.BlockSpec((tm, tv), lambda i, j: (i, j)),
                pl.BlockSpec((tm, 1), lambda i, j: (i, 0)),
            ],
            out_specs=pl.BlockSpec((tm, tv), lambda i, j: (i, j)),
        ),
        compiler_params=pltpu.CompilerParams(
            dimension_semantics=("parallel", "parallel"),
            vmem_limit_bytes=vmem_limit),
    )(logits_spill, lse)

    return out[:N, :V].reshape(B, S, V)


def _ref_bf16(x_, w_, b_):
    """Reference with the same bf16-operand / f32-accumulate matmul numerics."""
    logits = jnp.dot(x_.reshape(-1, x_.shape[-1]).astype(jnp.bfloat16),
                     w_.astype(jnp.bfloat16),
                     preferred_element_type=jnp.float32) + b_
    out = jax.nn.log_softmax(logits, axis=-1)
    return out.reshape(*x_.shape[:-1], w_.shape[1])


if __name__ == "__main__":
    # Shapes implied by the module: d_model=32, vocab=128, batch=2, seq=8
    B, S, D, V = 2, 8, 32, 128

    key = jax.random.PRNGKey(0)
    kx, kw, kb, kx2, kw2, kb2 = jax.random.split(key, 6)

    bound = 1.0 / (D ** 0.5)   # PyTorch-style Linear init range
    w = jax.random.uniform(kw, (D, V), jnp.float32, -bound, bound)
    b = jax.random.uniform(kb, (V,), jnp.float32, -bound, bound)
    x = jax.random.normal(kx, (B, S, D), jnp.float32)

    # Fast path (resident weight, fused kernel).
    out = jax.block_until_ready(generator_forward(x, w, b))
    assert out.shape == (B, S, V)
    assert jnp.allclose(out, _ref_bf16(x, w, b), atol=2e-3, rtol=2e-3), \
        "mismatch vs bf16-matched reference (fast path)"
    assert jnp.allclose(out, jax.nn.log_softmax(x @ w + b, axis=-1),
                        atol=5e-2, rtol=1e-2), \
        "mismatch vs f32 reference (fast path)"

    # Vocab-tiled path (online logsumexp + bf16 logits spill), ragged N.
    B2, S2, V2 = 2, 7, 256
    w2 = jax.random.uniform(kw2, (D, V2), jnp.float32, -bound, bound)
    b2 = jax.random.uniform(kb2, (V2,), jnp.float32, -bound, bound)
    x2 = jax.random.normal(kx2, (B2, S2, D), jnp.float32)

    out2 = jax.block_until_ready(generator_forward(x2, w2, b2, vocab_tile=128))
    assert out2.shape == (B2, S2, V2)
    # bf16 logits spill rounds each logit to ~0.2% relative; tolerance covers it.
    assert jnp.allclose(out2, _ref_bf16(x2, w2, b2), atol=1.5e-2, rtol=1e-2), \
        "mismatch vs bf16-matched reference (tiled path, bf16 spill)"
    assert jnp.allclose(out2, jax.nn.log_softmax(x2 @ w2 + b2, axis=-1),
                        atol=5e-2, rtol=1e-2), \
        "mismatch vs f32 reference (tiled path, bf16 spill)"

    # Tiled path with f32 spill and a non-128-multiple vocab (column padding).
    V3 = 200
    w3 = w2[:, :V3]
    b3 = b2[:V3]
    out3 = jax.block_until_ready(
        generator_forward(x2, w3, b3, vocab_tile=128, spill_dtype=jnp.float32))
    assert out3.shape == (B2, S2, V3)
    assert jnp.allclose(out3, _ref_bf16(x2, w3, b3), atol=2e-3, rtol=2e-3), \
        "mismatch vs bf16-matched reference (tiled path, f32 spill, padded V)"

    print("KERNEL_OK")
</pallas_src>

<mosaic_0001>
module attributes {stable_mosaic.version = 11 : i64} {
  func.func @_fused_logsoftmax_kernel(%arg0: i32, %arg1: memref<16x32xbf16, #tpu.memory_space<vmem>>, %arg2: memref<32x128xbf16, #tpu.memory_space<vmem>>, %arg3: memref<1x128xf32, #tpu.memory_space<vmem>>, %arg4: memref<16x128xf32, #tpu.memory_space<vmem>>) attributes {dimension_semantics = [#tpu.dimension_semantics<parallel>], iteration_bounds = array<i64: 1>, scalar_prefetch = 0 : i64, scratch_operands = 0 : i64, tpu.core_type = #tpu.core_type<tc>, window_params = [{transform_indices = @transform_0, window_bounds = array<i64: 16, 32>}, {pipeline_mode = #tpu.pipeline_mode<synchronous>, transform_indices = @transform_1, window_bounds = array<i64: 32, 128>}, {pipeline_mode = #tpu.pipeline_mode<synchronous>, transform_indices = @transform_2, window_bounds = array<i64: 1, 128>}, {transform_indices = @transform_3, window_bounds = array<i64: 16, 128>}]} {
    %c0 = arith.constant 0 : index
    %c0_0 = arith.constant 0 : index
    %0 = vector.load %arg1[%c0, %c0_0] : memref<16x32xbf16, #tpu.memory_space<vmem>>, vector<16x32xbf16>
    %c0_1 = arith.constant 0 : index
    %c0_2 = arith.constant 0 : index
    %1 = vector.load %arg2[%c0_1, %c0_2] : memref<32x128xbf16, #tpu.memory_space<vmem>>, vector<32x128xbf16>
    %cst = arith.constant dense<0.000000e+00> : vector<16x128xf32>
    %2 = tpu.matmul %0, %1, %cst {dimension_numbers = #tpu.dot_dimension_numbers<[1], [0], [0], [1], [0, 0, 1, 1], [], []>} : vector<16x32xbf16>, vector<32x128xbf16>, vector<16x128xf32> -> vector<16x128xf32>
    %c0_3 = arith.constant 0 : index
    %c0_4 = arith.constant 0 : index
    %3 = vector.load %arg3[%c0_3, %c0_4] : memref<1x128xf32, #tpu.memory_space<vmem>>, vector<1x128xf32>
    %4 = vector.broadcast %3 : vector<1x128xf32> to vector<16x128xf32>
    %5 = arith.addf %2, %4 : vector<16x128xf32>
    %cst_5 = arith.constant dense<0xFF800000> : vector<16xf32>
    %6 = vector.multi_reduction <maximumf>, %5, %cst_5 [1] : vector<16x128xf32> to vector<16xf32>
    %7 = vector.shape_cast %6 : vector<16xf32> to vector<16x1xf32>
    %8 = vector.broadcast %7 : vector<16x1xf32> to vector<16x128xf32>
    %9 = arith.subf %5, %8 : vector<16x128xf32>
    %10 = math.exp %9 : vector<16x128xf32>
    %cst_6 = arith.constant dense<0.000000e+00> : vector<16xf32>
    %11 = vector.multi_reduction <add>, %10, %cst_6 [1] : vector<16x128xf32> to vector<16xf32>
    %12 = vector.shape_cast %11 : vector<16xf32> to vector<16x1xf32>
    %13 = math.log %12 : vector<16x1xf32>
    %14 = vector.broadcast %13 : vector<16x1xf32> to vector<16x128xf32>
    %15 = arith.subf %9, %14 : vector<16x128xf32>
    %c0_7 = arith.constant 0 : index
    %c0_8 = arith.constant 0 : index
    %16 = vector.load %arg4[%c0_7, %c0_8] : memref<16x128xf32, #tpu.memory_space<vmem>>, vector<16x128xf32>
    tpu.vector_store %arg4[%c0_7, %c0_8], %15 {strides = array<i32>} : memref<16x128xf32, #tpu.memory_space<vmem>>, vector<16x128xf32>,
    return
  }
  func.func @transform_0(%arg0: i32) -> (i32, i32) {
    %c0_i32 = arith.constant 0 : i32
    %c0_i32_0 = arith.constant 0 : i32
    return %arg0, %c0_i32 : i32, i32
  }
  func.func @transform_1(%arg0: i32) -> (i32, i32) {
    %c0_i32 = arith.constant 0 : i32
    %c0_i32_0 = arith.constant 0 : i32
    %c0_i32_1 = arith.constant 0 : i32
    return %c0_i32, %c0_i32_0 : i32, i32
  }
  func.func @transform_2(%arg0: i32) -> (i32, i32) {
    %c0_i32 = arith.constant 0 : i32
    %c0_i32_0 = arith.constant 0 : i32
    %c0_i32_1 = arith.constant 0 : i32
    return %c0_i32, %c0_i32_0 : i32, i32
  }
  func.func @transform_3(%arg0: i32) -> (i32, i32) {
    %c0_i32 = arith.constant 0 : i32
    %c0_i32_0 = arith.constant 0 : i32
    return %arg0, %c0_i32 : i32, i32
  }
}

</mosaic_0001>

<bundles_post_ra>
// kernel: tpu_custom_call.1
= control target key start
LH: loop header
LB: loop body
LE: loop exit
PB: predicated region body
PF: predicated region fallthrough
CT: control target
= control target key end

     0   :  { %8 = vsyncpa [#allocation3], 0  ;;  %s302_s0 = inlined_call_operand.hbm [shape: bf16[16,32], index: 0, kind: input, shape index: {}]   ;;  %s303_s1 = inlined_call_operand.hbm [shape: bf16[32,128], index: 1, kind: input, shape index: {}]   ;;  %s304_s2 = inlined_call_operand.vmem [shape: f32[1,128], index: 2, kind: input, shape index: {}]   ;;  %s305_s3 = inlined_call_operand.hbm [shape: f32[16,128], index: 3, kind: output, shape index: {}]  }
   0x1   :  { %9 = vsyncpa [#allocation6], 0 }
   0x2   :  { %10 = vsyncpa [#allocation4], 0  ;;  %s261_s12 = smov [#allocation2]  }
   0x3   :  { %s16_s13 = sshll.u32 %s261_s12, 4  ;;  %s17_s13 = int_to_ptr.vmem [resolvable:$true] %s16_s13 }
   0x4   :  { %s203_s14 = scalar_lea.vmem %s17_s13, 128  ;;  %p208_p1 = scmp.lt.s32.totalorder %s17_s13, %s17_s13 }
   0x5   :  { %p204_p0 = scmp.ne.s32.totalorder %s17_s13, %s203_s14  ;;  %p209_p2 = scmp.lt.s32.totalorder %s203_s14, %s203_s14 }
   0x7   :  { %p210_p3 = por %p209_p2, %p208_p1 }
   0x9   :  { %p211_p4 = pnand %p210_p3, %p204_p0 }
   0xb   :  { %214 = shalt.err (!%p211_p4)
}
   0xc   :  { %s262_s15 = smov 64   ;;  %s263_s16 = smov 4  }
   0xd   :  { %22 = dma.hbm_to_vmem [thread:$0]  %s302_s0, 128, %s17_s13, [#allocation3], %s262_s15, %s262_s15, %s263_s16  }
   0xe   :  { %s264_s19 = smov [#allocation5]  }
   0xf   :  { %s28_s20 = sshll.u32 %s264_s19, 4  ;;  %s29_s20 = int_to_ptr.vmem [resolvable:$true] %s28_s20 }
  0x10   :  { %s223_s21 = scalar_lea.vmem %s29_s20, 256  ;;  %p228_p6 = scmp.lt.s32.totalorder %s29_s20, %s29_s20 }
  0x11   :  { %p224_p5 = scmp.ne.s32.totalorder %s29_s20, %s223_s21  ;;  %p229_p7 = scmp.lt.s32.totalorder %s223_s21, %s223_s21 }
  0x13   :  { %p230_p8 = por %p229_p7, %p228_p6 }
  0x15   :  { %p231_p9 = pnand %p230_p8, %p224_p5 }
  0x17   :  { %234 = shalt.err (!%p231_p9)
}
  0x18   :  { %34 = dma.hbm_to_vmem [thread:$0]  %s303_s1, 256, %s29_s20, [#allocation6], %s262_s15, %s262_s15, %s263_s16  }
  0x19   :  { %255 = dma.done.wait [#allocation3], 128  }
  0x1a   :  { %256 = vsyncadd [#allocation3], 4294967168 }
  0x1b   :  { %257 = dma.done.wait [#allocation6], 256  }
  0x1c   :  { %258 = vsyncadd [#allocation6], 4294967040  ;;  %v265_v0 = vmov 0.0   ;;  %vm266_vm0 = vmmov 0   ;;  %v184_v1 = vld [vmem:[#allocation5 + $0x8] sm:$0xff]   ;;  %v185_v2 = vld [vmem:[#allocation5] sm:$0xff]  }
  0x1d   :  { %167 = vmatprep.subr.bf16.mxu0 %v265_v0  ;;  %171 = vmatprep.mubr.msk.bf16.mxu0 %vm266_vm0, %v265_v0  ;;  %v186_v3 = vld [vmem:[#allocation2] sm:$0xff]   ;;  %vm74_vm1 = vcmask 261120   ;;  %s267_s1 = smov [#allocation7]  }
  0x1e   :  { %168 = vmatpush3.bf16.msra.mxu0 %v184_v1  ;;  %v159_v4 = vld [vmem:[%s304_s2] ss:$0 sm:$0xff]  ;;  %s146_s2 = sshll.u32 %s267_s1, 4  ;;  %s147_s2 = int_to_ptr.vmem [resolvable:$true] %s146_s2 }
  0x1f   :  { %169 = vmatprep.subr.bf16.mxu0 %v265_v0  ;;  %s235_s25 = scalar_lea.vmem %s147_s2, 256  ;;  %p240_p11 = scmp.lt.s32.totalorder %s147_s2, %s147_s2 }
  0x20   :  { %p236_p10 = scmp.ne.s32.totalorder %s147_s2, %s235_s25  ;;  %p241_p12 = scmp.lt.s32.totalorder %s235_s25, %s235_s25 }
  0x22   :  { %170 = vmatpush3.bf16.msra.mxu0 %v185_v2  ;;  %p242_p13 = por %p241_p12, %p240_p11 }
  0x24   :  { %p243_p0 = pnand %p242_p13, %p236_p10 }
  0x25   :  { %172 = vmatmul.mubr.msk.bf16.vlgmr.msra.gmra.mxu0 %vm74_vm1, %v186_v3 }
  0xe5   :  { %v112_v5 = vpop.f32.mrf.mxu0 }
  0xe6   :  { %v113_v6 = vadd.f32 %v159_v4, %v112_v5 }
  0xe7   :  { %v173_v7 = vpop.f32.mrf.mxu0 }
  0xe8   :  { %119 = vmax.xlane.f32.xlu0 %v113_v6 }
  0xe9   :  { %v115_v8 = vpop.f32.mrf.mxu0 }
  0xea   :  { %v116_v9 = vadd.f32 %v159_v4, %v115_v8 }
  0xeb   :  { %v174_v10 = vpop.f32.mrf.mxu0 }
  0xec   :  { %121 = vmax.xlane.f32.xlu0 %v116_v9 }
 0x171   :  { %v120_v11 = vpop.xlane.xlu0 %119 }
 0x172   :  { %v123_v12 = vsub.f32 %v113_v6, %v120_v11 }
 0x174   :  { %v125_v13 = vmul.f32 1.442695, %v123_v12 }
 0x175   :  { %v122_v14 = vpop.xlane.xlu0 %121 }
 0x176   :  { %v124_v15 = vsub.f32 %v116_v9, %v122_v14  ;;  %187 = vpow2.f32 %v125_v13 }
 0x178   :  { %v127_v16 = vmul.f32 1.442695, %v124_v15 }
 0x17a   :  { %189 = vpow2.f32 %v127_v16 }
 0x183   :  { %v188_v17 = vpop.eup %187 }
 0x184   :  { %129 = vadd.xlane.f32.xlu1 %v188_v17 }
 0x187   :  { %v190_v18 = vpop.eup %189 }
 0x188   :  { %131 = vadd.xlane.f32.xlu1 %v190_v18 }
 0x20d   :  { %v130_v19 = vpop.xlane.xlu1 %129 }
 0x20e   :  { %191 = vlog2.f32 %v130_v19 }
 0x211   :  { %v132_v20 = vpop.xlane.xlu1 %131 }
 0x212   :  { %193 = vlog2.f32 %v132_v20 }
 0x21b   :  { %v192_v21 = vpop.eup %191 }
 0x21c   :  { %v134_v22 = vmul.f32 0.6931472, %v192_v21 }
 0x21e   :  { %v137_v23 = vsub.f32 %v123_v12, %v134_v22 }
 0x21f   :  { %v194_v24 = vpop.eup %193 }
 0x220   :  { %139 = vst [vmem:[#allocation7] sm:$0xff] %v137_v23  ;;  %v136_v25 = vmul.f32 0.6931472, %v194_v24 }
 0x222   :  { %v138_v26 = vsub.f32 %v124_v15, %v136_v25 }
 0x224   :  { %140 = vst [vmem:[#allocation7 + $0x8] sm:$0xff] %v138_v26 }
 0x225   :  { %246 = shalt.err (!%p243_p0)
}
 0x226   :  { %s268_s26 = smov 128   ;;  %s269_s27 = smov 8  }
 0x227   :  { %152 = dma.vmem_to_hbm [thread:$0]  %s147_s2, 256, %s305_s3, [#allocation4], %s268_s26, %s268_s26, %s269_s27  }
 0x228   :  { %259 = dma.done.wait [#allocation4], 256  }
 0x229   :  { %260 = vsyncadd [#allocation4], 4294967040 }
 0x22a   :  { %156 = vsyncpa [#allocation3], 1 }
 0x22b   :  { %157 = vsyncpa [#allocation6], 1 }
 0x22c   :  { %158 = vsyncpa [#allocation4], 1 }

</bundles_post_ra>
